<compile_context>
chip_gen: v7x
topology: tpu7x:2x2x1
jax: 0.10.0
libtpu: 0.0.40
codegen_flags: <defaults>
</compile_context>

<pallas_src>
import functools

import jax
import jax.numpy as jnp
from jax.experimental import pallas as pl
from jax.experimental.pallas import tpu as pltpu

EPS = 1e-5


# --------------------------------------------------------------- pass 1: stats
def _stats_kernel(x_ref, sum_ref, gram_ref):
    """Per-batch-item partial sum(x) and Gram = x @ x^T.

    Batch grid axis is 'parallel' (each n owns its own output blocks -> no
    race under megacore); spatial grid axis is 'arbitrary' and accumulated.
    """

    @pl.when(pl.program_id(1) == 0)
    def _init():
        sum_ref[...] = jnp.zeros_like(sum_ref)
        gram_ref[...] = jnp.zeros_like(gram_ref)

    x = x_ref[0]                                           # (C, T) float32
    # Contract the lane axis of both operands (A @ B^T) -> MXU-native path.
    g = jax.lax.dot_general(x, x, (((1,), (1,)), ((), ())),
                            preferred_element_type=jnp.float32)
    # NOTE: the cross-lane sum is free filler while pass 1 is HBM-bound; the
    # augmented-ones Gram trick is intentionally not applied (low priority).
    sum_ref[...] += jnp.sum(x, axis=1, keepdims=True)[None]
    gram_ref[...] += g[None]


# --------------------------------------------------------------- pass 2: apply
def _apply_kernel(x_ref, w_ref, c_ref, o_ref):
    """out = W_eff @ x + c_eff for one (1, C, T) tile (all branches fused)."""
    y = jnp.dot(w_ref[...], x_ref[0],
                preferred_element_type=jnp.float32) + c_ref[...]
    o_ref[0] = y.astype(o_ref.dtype)


# --------------------------------------------------------------- param folding
def _fold_params(sum_parts, gram_parts, m, p):
    """Collapse conv1/conv2/identity branches + their train-mode BNs into one
    affine map (W_eff, c_eff), using batch stats derived from sum(x), x x^T."""
    hp = jax.lax.Precision.HIGHEST
    sum_x = jnp.sum(sum_parts, axis=0)[:, 0]               # (C,)
    gram = jnp.sum(gram_parts, axis=0)                     # (C, C)
    mu = sum_x / m                                         # E[x]
    cov = gram / m - jnp.outer(mu, mu)                     # biased Cov(x)

    def conv_branch(w, b, g, be):
        # y = W x + b  =>  mean_y = W mu + b ; var_y = diag(W Cov W^T)
        mean_y = jnp.einsum("oi,i->o", w, mu, precision=hp) + b
        var_y = jnp.einsum("oi,ik,ok->o", w, cov, w, precision=hp)
        var_y = jnp.maximum(var_y, 0.0)                    # cancellation guard
        a = g * jax.lax.rsqrt(var_y + EPS)                 # per-channel, once
        return a[:, None] * w, a * (b - mean_y) + be

    w1, c1 = conv_branch(p["w1"], p["b1"], p["g1"], p["be1"])
    w2, c2 = conv_branch(p["w2"], p["b2"], p["g2"], p["be2"])
    var3 = jnp.maximum(jnp.diag(cov), 0.0)                 # cancellation guard
    a3 = p["g3"] * jax.lax.rsqrt(var3 + EPS)
    w3, c3 = jnp.diag(a3), -a3 * mu + p["be3"]

    w_eff = w1 + w2 + w3                                   # (C_out, C_in)
    c_eff = (c1 + c2 + c3)[:, None]                        # (C, 1)
    return w_eff, c_eff


# ------------------------------------------------------------------- planning
def _vmem_capacity_bytes():
    try:
        return int(pltpu.get_tpu_info().vmem_capacity_bytes)
    except Exception:
        return 64 * 1024 * 1024            # conservative: v7x physical VMEM


def _plan(hw, c, hw_tile=None):
    """Generation-aware tile / pipeline plan.

    Returns (T, HW_pad, in_buffers, vmem_limit_bytes)."""
    vmem_cap = _vmem_capacity_bytes()
    # Scoped-VMEM limit: ~75% of physical (≈48 MiB v7x, ≈96 MiB v5e/v6e),
    # explicitly raised above the 16/32 MiB defaults.
    vmem_limit = min(int(vmem_cap * 0.75), 100 * 1024 * 1024)
    budget = int(vmem_limit * 0.85)        # headroom inside the scoped limit

    def pass2_bytes(t, in_bufs):
        tile = c * t * 4
        weights = 2 * (c * c + c) * 4      # W_eff + c_eff (double-buffered)
        return (in_bufs + 2) * tile + weights

    def pass1_bytes(t):
        tile = c * t * 4
        acc = 2 * (c * c + c) * 4          # per-n partial sum + Gram buffers
        return 2 * tile + acc

    # Largest multiple-of-128 lane tile (capped at 2048) fitting both passes
    # with standard double buffering.
    t_fit = 128
    t = 128
    while t <= 2048:
        if max(pass1_bytes(t), pass2_bytes(t, 2)) <= budget:
            t_fit = t
        t += 128

    hw_r128 = ((hw + 127) // 128) * 128
    if hw_tile is not None:
        assert hw_tile % 128 == 0, "hw_tile must be a multiple of 128"
        t = hw_tile
    elif hw_r128 <= t_fit:
        t = hw_r128                        # whole image in one lane tile
    elif hw % 128 == 0:
        # Prefer an exact divisor (no pad copy) when it is still >= 512 lanes.
        div = max((d for d in range(128, t_fit + 1, 128) if hw % d == 0),
                  default=128)
        t = div if div >= 512 else t_fit
    else:
        t = t_fit                          # ragged HW -> zero-pad to a tile
    hw_pad = ((hw + t - 1) // t) * t

    # Deeper pass-2 input pipelining only where VMEM is plentiful (v5e/v6e)
    # and the spatial grid is long enough for it to matter.
    in_bufs = 2
    if (vmem_cap >= 96 * 1024 * 1024 and hw_pad // t >= 3
            and pass2_bytes(t, 3) <= budget):
        in_bufs = 3
    return t, hw_pad, in_bufs, vmem_limit


# --------------------------------------------------------------------- wrapper
def repconv_pallas(x_nchw, params, *, hw_tile=None):
    """Training-mode RepConv forward. x_nchw: (N, C, H, W) float32."""
    N, C, H, W = x_nchw.shape
    HW = H * W
    T, HW_pad, in_bufs, vmem_limit = _plan(HW, C, hw_tile)

    x = x_nchw.reshape(N, C, HW)           # free view, stays NCHW
    if HW_pad != HW:
        # Zero padding is stats-neutral (zero columns add nothing to sum/Gram).
        x = jnp.pad(x, ((0, 0), (0, 0), (0, HW_pad - HW)))

    grid = (N, HW_pad // T)
    x_spec = pl.BlockSpec((1, C, T), lambda n, h: (n, 0, h))

    # Pass 1: per-batch partial stats; batch axis 'parallel' (megacore-safe
    # because each n writes its own partial block), spatial axis accumulated.
    sum_parts, gram_parts = pl.pallas_call(
        _stats_kernel,
        out_shape=(jax.ShapeDtypeStruct((N, C, 1), jnp.float32),
                   jax.ShapeDtypeStruct((N, C, C), jnp.float32)),
        grid=grid,
        in_specs=[x_spec],
        out_specs=(pl.BlockSpec((1, C, 1), lambda n, h: (n, 0, 0)),
                   pl.BlockSpec((1, C, C), lambda n, h: (n, 0, 0))),
        compiler_params=pltpu.CompilerParams(
            dimension_semantics=("parallel", "arbitrary"),
            vmem_limit_bytes=vmem_limit),
    )(x)

    # Tiny CxC epilogue: fold both convs + all three BNs into a single affine.
    w_eff, c_eff = _fold_params(sum_parts, gram_parts,
                                jnp.float32(N * HW), params)

    # Pass 2: fused matmul + bias, fully parallel tiles (megacore-shardable).
    if in_bufs != 2:
        x_in_spec = pl.BlockSpec((1, C, T), lambda n, h: (n, 0, h),
                                 pipeline_mode=pl.Buffered(in_bufs))
    else:
        x_in_spec = x_spec
    out = pl.pallas_call(
        _apply_kernel,
        out_shape=jax.ShapeDtypeStruct((N, C, HW_pad), jnp.float32),
        grid=grid,
        in_specs=[x_in_spec,
                  pl.BlockSpec((C, C), lambda n, h: (0, 0)),
                  pl.BlockSpec((C, 1), lambda n, h: (0, 0))],
        out_specs=x_spec,
        compiler_params=pltpu.CompilerParams(
            dimension_semantics=("parallel", "parallel"),
            vmem_limit_bytes=vmem_limit),
    )(x, w_eff, c_eff)

    if HW_pad != HW:
        out = out[:, :, :HW]
    return out.reshape(N, C, H, W)


# ------------------------------------------------------------------- reference
def repconv_reference(x, p):
    """Pure-JAX NCHW reference of the same training-mode forward (validation)."""
    hp = jax.lax.Precision.HIGHEST

    def conv1x1(x, w, b):
        return jnp.einsum("oi,nihw->nohw", w, x, precision=hp) \
            + b[None, :, None, None]

    def bn_train(y, g, be):
        m = jnp.mean(y, axis=(0, 2, 3), keepdims=True)
        v = jnp.mean(jnp.square(y - m), axis=(0, 2, 3), keepdims=True)
        return (y - m) * jax.lax.rsqrt(v + EPS) * g[None, :, None, None] \
            + be[None, :, None, None]

    return (bn_train(conv1x1(x, p["w1"], p["b1"]), p["g1"], p["be1"])
            + bn_train(conv1x1(x, p["w2"], p["b2"]), p["g2"], p["be2"])
            + bn_train(x, p["g3"], p["be3"]))


def init_params(key, C):
    """Synthetic parameters in PyTorch conventions: conv weight (C_out, C_in),
    conv bias (C,). Gammas/betas randomized so the full affine path is used."""
    k = 1.0 / jnp.sqrt(jnp.float32(C))
    ks = jax.random.split(key, 10)
    u = lambda kk, shape, lo, hi: jax.random.uniform(kk, shape, jnp.float32, lo, hi)
    return {
        "w1": u(ks[0], (C, C), -k, k), "b1": u(ks[1], (C,), -k, k),
        "w2": u(ks[2], (C, C), -k, k), "b2": u(ks[3], (C,), -k, k),
        "g1": u(ks[4], (C,), 0.5, 1.5), "be1": u(ks[5], (C,), -0.5, 0.5),
        "g2": u(ks[6], (C,), 0.5, 1.5), "be2": u(ks[7], (C,), -0.5, 0.5),
        "g3": u(ks[8], (C,), 0.5, 1.5), "be3": u(ks[9], (C,), -0.5, 0.5),
    }


if __name__ == "__main__":
    key = jax.random.PRNGKey(0)
    kx, kp = jax.random.split(key)

    N, C, H, W = 2, 4, 16, 16
    x = jax.random.normal(kx, (N, C, H, W), jnp.float32)
    params = init_params(kp, C)

    def check(fn, xv, name):
        out = jax.block_until_ready(fn(xv, params))
        assert out.shape == xv.shape
        ref = repconv_reference(xv, params)
        err = float(jnp.max(jnp.abs(out - ref)))
        assert jnp.allclose(out, ref, atol=1e-3, rtol=1e-3), \
            f"{name}: mismatch vs reference, max abs err = {err}"

    # Forced 128-lane tiles -> grid (2, 2): exercises multi-step accumulation
    # and the software pipeline even at this toy size.
    check(jax.jit(functools.partial(repconv_pallas, hw_tile=128)), x, "tiled")
    # Auto plan -> one 256-lane tile per batch item.
    check(jax.jit(repconv_pallas), x, "auto")
    # Ragged spatial extent (HW = 100, not a multiple of 128) -> zero-padded.
    x_ragged = jax.random.normal(kx, (2, 4, 10, 10), jnp.float32)
    check(jax.jit(repconv_pallas), x_ragged, "ragged")

    print("KERNEL_OK")
</pallas_src>

<mosaic_0001>
module attributes {stable_mosaic.version = 11 : i64} {
  func.func @_stats_kernel(%arg0: i32, %arg1: i32, %arg2: memref<1x4x128xf32, #tpu.memory_space<vmem>>, %arg3: memref<1x4x1xf32, #tpu.memory_space<vmem>>, %arg4: memref<1x4x4xf32, #tpu.memory_space<vmem>>) attributes {dimension_semantics = [#tpu.dimension_semantics<parallel>, #tpu.dimension_semantics<arbitrary>], iteration_bounds = array<i64: 2, 2>, scalar_prefetch = 0 : i64, scratch_operands = 0 : i64, tpu.core_type = #tpu.core_type<tc>, window_params = [{transform_indices = @transform_0, window_bounds = array<i64: 1, 4, 128>}, {transform_indices = @transform_1, window_bounds = array<i64: 1, 4, 1>}, {transform_indices = @transform_2, window_bounds = array<i64: 1, 4, 4>}]} {
    %c0_i32 = arith.constant 0 : i32
    %0 = arith.cmpi eq, %arg1, %c0_i32 : i32
    %1 = arith.extui %0 : i1 to i32
    %c0_i32_0 = arith.constant 0 : i32
    %2 = arith.cmpi ne, %1, %c0_i32_0 : i32
    scf.if %2 {
      %cst_16 = arith.constant 0.000000e+00 : f32
      %16 = vector.broadcast %cst_16 : f32 to vector<1x4x1xf32>
      %c0_17 = arith.constant 0 : index
      %c0_18 = arith.constant 0 : index
      %c0_19 = arith.constant 0 : index
      %17 = vector.load %arg3[%c0_17, %c0_18, %c0_19] : memref<1x4x1xf32, #tpu.memory_space<vmem>>, vector<1x4x1xf32>
      tpu.vector_store %arg3[%c0_17, %c0_18, %c0_19], %16 {strides = array<i32>} : memref<1x4x1xf32, #tpu.memory_space<vmem>>, vector<1x4x1xf32>,
      %cst_20 = arith.constant 0.000000e+00 : f32
      %18 = vector.broadcast %cst_20 : f32 to vector<1x4x4xf32>
      %c0_21 = arith.constant 0 : index
      %c0_22 = arith.constant 0 : index
      %c0_23 = arith.constant 0 : index
      %19 = vector.load %arg4[%c0_21, %c0_22, %c0_23] : memref<1x4x4xf32, #tpu.memory_space<vmem>>, vector<1x4x4xf32>
      tpu.vector_store %arg4[%c0_21, %c0_22, %c0_23], %18 {strides = array<i32>} : memref<1x4x4xf32, #tpu.memory_space<vmem>>, vector<1x4x4xf32>,
    } else {
    }
    %c0 = arith.constant 0 : index
    %c0_1 = arith.constant 0 : index
    %c0_2 = arith.constant 0 : index
    %3 = vector.load %arg2[%c0, %c0_1, %c0_2] : memref<1x4x128xf32, #tpu.memory_space<vmem>>, vector<1x4x128xf32>
    %4 = vector.shape_cast %3 : vector<1x4x128xf32> to vector<4x128xf32>
    %cst = arith.constant dense<0.000000e+00> : vector<4x4xf32>
    %5 = tpu.matmul %4, %4, %cst {dimension_numbers = #tpu.dot_dimension_numbers<[1], [1], [0], [0], [0, 0, 1, 0], [], []>} : vector<4x128xf32>, vector<4x128xf32>, vector<4x4xf32> -> vector<4x4xf32>
    %c0_3 = arith.constant 0 : index
    %c0_4 = arith.constant 0 : index
    %c0_5 = arith.constant 0 : index
    %6 = vector.load %arg3[%c0_3, %c0_4, %c0_5] : memref<1x4x1xf32, #tpu.memory_space<vmem>>, vector<1x4x1xf32>
    %cst_6 = arith.constant dense<0.000000e+00> : vector<4xf32>
    %7 = vector.multi_reduction <add>, %4, %cst_6 [1] : vector<4x128xf32> to vector<4xf32>
    %8 = vector.shape_cast %7 : vector<4xf32> to vector<4x1xf32>
    %9 = vector.shape_cast %8 : vector<4x1xf32> to vector<1x4x1xf32>
    %10 = arith.addf %6, %9 : vector<1x4x1xf32>
    %c0_7 = arith.constant 0 : index
    %c0_8 = arith.constant 0 : index
    %c0_9 = arith.constant 0 : index
    %11 = vector.load %arg3[%c0_7, %c0_8, %c0_9] : memref<1x4x1xf32, #tpu.memory_space<vmem>>, vector<1x4x1xf32>
    tpu.vector_store %arg3[%c0_7, %c0_8, %c0_9], %10 {strides = array<i32>} : memref<1x4x1xf32, #tpu.memory_space<vmem>>, vector<1x4x1xf32>,
    %c0_10 = arith.constant 0 : index
    %c0_11 = arith.constant 0 : index
    %c0_12 = arith.constant 0 : index
    %12 = vector.load %arg4[%c0_10, %c0_11, %c0_12] : memref<1x4x4xf32, #tpu.memory_space<vmem>>, vector<1x4x4xf32>
    %13 = vector.shape_cast %5 : vector<4x4xf32> to vector<1x4x4xf32>
    %14 = arith.addf %12, %13 : vector<1x4x4xf32>
    %c0_13 = arith.constant 0 : index
    %c0_14 = arith.constant 0 : index
    %c0_15 = arith.constant 0 : index
    %15 = vector.load %arg4[%c0_13, %c0_14, %c0_15] : memref<1x4x4xf32, #tpu.memory_space<vmem>>, vector<1x4x4xf32>
    tpu.vector_store %arg4[%c0_13, %c0_14, %c0_15], %14 {strides = array<i32>} : memref<1x4x4xf32, #tpu.memory_space<vmem>>, vector<1x4x4xf32>,
    return
  }
  func.func @transform_0(%arg0: i32, %arg1: i32) -> (i32, i32, i32) {
    %c0_i32 = arith.constant 0 : i32
    %c0_i32_0 = arith.constant 0 : i32
    return %arg0, %c0_i32, %arg1 : i32, i32, i32
  }
  func.func @transform_1(%arg0: i32, %arg1: i32) -> (i32, i32, i32) {
    %c0_i32 = arith.constant 0 : i32
    %c0_i32_0 = arith.constant 0 : i32
    %c0_i32_1 = arith.constant 0 : i32
    return %arg0, %c0_i32, %c0_i32_0 : i32, i32, i32
  }
  func.func @transform_2(%arg0: i32, %arg1: i32) -> (i32, i32, i32) {
    %c0_i32 = arith.constant 0 : i32
    %c0_i32_0 = arith.constant 0 : i32
    %c0_i32_1 = arith.constant 0 : i32
    return %arg0, %c0_i32, %c0_i32_0 : i32, i32, i32
  }
}

module attributes {stable_mosaic.version = 11 : i64} {
  func.func @_apply_kernel(%arg0: i32, %arg1: i32, %arg2: memref<1x4x128xf32, #tpu.memory_space<vmem>>, %arg3: memref<4x4xf32, #tpu.memory_space<vmem>>, %arg4: memref<4x1xf32, #tpu.memory_space<vmem>>, %arg5: memref<1x4x128xf32, #tpu.memory_space<vmem>>) attributes {dimension_semantics = [#tpu.dimension_semantics<parallel>, #tpu.dimension_semantics<parallel>], iteration_bounds = array<i64: 2, 2>, scalar_prefetch = 0 : i64, scratch_operands = 0 : i64, tpu.core_type = #tpu.core_type<tc>, window_params = [{transform_indices = @transform_0, window_bounds = array<i64: 1, 4, 128>}, {pipeline_mode = #tpu.pipeline_mode<synchronous>, transform_indices = @transform_1, window_bounds = array<i64: 4, 4>}, {pipeline_mode = #tpu.pipeline_mode<synchronous>, transform_indices = @transform_2, window_bounds = array<i64: 4, 1>}, {transform_indices = @transform_3, window_bounds = array<i64: 1, 4, 128>}]} {
    %c0 = arith.constant 0 : index
    %c0_0 = arith.constant 0 : index
    %0 = vector.load %arg3[%c0, %c0_0] : memref<4x4xf32, #tpu.memory_space<vmem>>, vector<4x4xf32>
    %c0_1 = arith.constant 0 : index
    %c0_2 = arith.constant 0 : index
    %c0_3 = arith.constant 0 : index
    %1 = vector.load %arg2[%c0_1, %c0_2, %c0_3] : memref<1x4x128xf32, #tpu.memory_space<vmem>>, vector<1x4x128xf32>
    %2 = vector.shape_cast %1 : vector<1x4x128xf32> to vector<4x128xf32>
    %cst = arith.constant dense<0.000000e+00> : vector<4x128xf32>
    %3 = tpu.matmul %0, %2, %cst {dimension_numbers = #tpu.dot_dimension_numbers<[1], [0], [0], [1], [0, 0, 1, 1], [], []>} : vector<4x4xf32>, vector<4x128xf32>, vector<4x128xf32> -> vector<4x128xf32>
    %c0_4 = arith.constant 0 : index
    %c0_5 = arith.constant 0 : index
    %4 = vector.load %arg4[%c0_4, %c0_5] : memref<4x1xf32, #tpu.memory_space<vmem>>, vector<4x1xf32>
    %5 = vector.broadcast %4 : vector<4x1xf32> to vector<4x128xf32>
    %6 = arith.addf %3, %5 : vector<4x128xf32>
    %c0_6 = arith.constant 0 : index
    %c0_7 = arith.constant 0 : index
    %c0_8 = arith.constant 0 : index
    %7 = vector.load %arg5[%c0_6, %c0_7, %c0_8] : memref<1x4x128xf32, #tpu.memory_space<vmem>>, vector<1x4x128xf32>
    %8 = vector.shape_cast %7 : vector<1x4x128xf32> to vector<4x128xf32>
    %9 = vector.shape_cast %6 : vector<4x128xf32> to vector<1x4x128xf32>
    tpu.vector_store %arg5[%c0_6, %c0_7, %c0_8], %9 {strides = array<i32>} : memref<1x4x128xf32, #tpu.memory_space<vmem>>, vector<1x4x128xf32>,
    return
  }
  func.func @transform_0(%arg0: i32, %arg1: i32) -> (i32, i32, i32) {
    %c0_i32 = arith.constant 0 : i32
    %c0_i32_0 = arith.constant 0 : i32
    return %arg0, %c0_i32, %arg1 : i32, i32, i32
  }
  func.func @transform_1(%arg0: i32, %arg1: i32) -> (i32, i32) {
    %c0_i32 = arith.constant 0 : i32
    %c0_i32_0 = arith.constant 0 : i32
    %c0_i32_1 = arith.constant 0 : i32
    return %c0_i32, %c0_i32_0 : i32, i32
  }
  func.func @transform_2(%arg0: i32, %arg1: i32) -> (i32, i32) {
    %c0_i32 = arith.constant 0 : i32
    %c0_i32_0 = arith.constant 0 : i32
    %c0_i32_1 = arith.constant 0 : i32
    return %c0_i32, %c0_i32_0 : i32, i32
  }
  func.func @transform_3(%arg0: i32, %arg1: i32) -> (i32, i32, i32) {
    %c0_i32 = arith.constant 0 : i32
    %c0_i32_0 = arith.constant 0 : i32
    return %arg0, %c0_i32, %arg1 : i32, i32, i32
  }
}

</mosaic_0001>

<bundles_post_ra>
// kernel: repconv_pallas.2
= control target key start
LH: loop header
LB: loop body
LE: loop exit
PB: predicated region body
PF: predicated region fallthrough
CT: control target
= control target key end

     0   :  { %s488_s9 = smov 0   ;;  %s490_s10 = smov 0   ;;  %s542_s0 = inlined_call_operand.vmem [shape: f32[2,4,256], index: 0, kind: input, shape index: {}]   ;;  %s543_s1 = inlined_call_operand.vmem [shape: f32[2,4,1], index: 1, kind: output, shape index: {0}]   ;;  %s544_s2 = inlined_call_operand.vmem [shape: f32[2,4,4], index: 2, kind: output, shape index: {1}]  }
   0x1   :  { %s492_s11 = smov 0   ;;  %s494_s12 = smov 0  }
   0x2   :  { %s496_s13 = smov 0  }
   0x3 LB: > { %s22_s14 = sadd.s32 1, %s460_s11  ;;  %s25_s15 = sadd.s32 1, %s464_s12  ;;  %s468_s13 = sphi %s496_s13, %s13_s13   ;;  %s464_s12 = sphi %s494_s12, %s548_s12   ;;  %s460_s11 = sphi %s492_s11, %s547_s11   ;;  %s456_s10 = sphi %s490_s10, %s546_s10   ;;  %s452_s9 = sphi %s488_s9, %s545_s9  }
   0x4   : > { %p23_p0 = scmp.ge.s32.totalorder %s22_s14, 2  ;;  %p372_p1 = scmp.ge.s32.totalorder %s468_s13, 1 }
   0x5   : > { %p132_p2 = scmp.lt.s32.totalorder %s468_s13, 5 }
   0x6   : > { %s550_s14 = smov (%p23_p0, %s22_s14), 0  ;;  %s552_s15 = smov (!%p23_p0, %s25_s15), %s464_s12 }
   0x7   : > { %p133_p3 = pnand %p372_p1, %p132_p2  ;;  %p27_p4 = scmp.ge.s32.totalorder %s552_s15, 2 }
   0x8   : > { %p160_p5 = scmp.lt.s32.totalorder (!%p133_p3), %s456_s10, 1  ;;  %p162_p6 = scmp.lt.s32.totalorder (!%p133_p3), %s452_s9, 1 }
   0x9   : > { %s554_s15 = smov (%p27_p4, %s552_s15), 0  ;;  %136 = sbr.rel (%p133_p3) target bundleno = 243 (0xf3), region = 24 }
   0xa   : > { %p377_p7 = scmp.ne.s32.totalorder (!%p133_p3), %s452_s9, 0 }
  0x10   : > { %s556_s10 = smov (!%p160_p5, %s456_s10), 1  ;;  %179 = sbr.rel (%p377_p7) target bundleno = 23 (0x17), region = 28 }
  0x11   : > { %s163_s16 = scalar_select %p162_p6, %s452_s9, 1 }
  0x12   : > { %s373_s17 = sshll.u32 %s556_s10, 1  ;;  %s375_s18 = sshll.u32 %s556_s10, 2  ;;  %vm180_vm0 = vcmask (!%p377_p7), 3072   ;;  %vm182_vm1 = vcmask (!%p377_p7), 27648   ;;  %v470_v0 = vmov (!%p377_p7), 0.0  }
  0x13   : > { %s165_s19 = sadd.s32 %s373_s17, %s163_s16  ;;  %s171_s22 = scalar_lea.vmem %s543_s1, %s375_s18 }
  0x14   : > { %s374_s23 = sshll.u32 %s165_s19, 2  ;;  %s175_s26 = scalar_lea.vmem %s544_s2, %s375_s18  ;;  %181 = vst.msk [vmem:[%s171_s22] sm:$0xf] (!%p377_p7), %vm180_vm0, %v470_v0 }
  0x15   : > { %s167_s29 = scalar_lea.vmem %s542_s0, %s374_s23  ;;  %183 = vst.msk [vmem:[%s175_s26] sm:$0xf] (!%p377_p7), %vm182_vm1, %v470_v0 }
  0x17 PF: > { %v184_v1 = vld [vmem:[%s167_s29] sm:$0xf]  ;;  %vm256_vm2 = vcmask 1043456   ;;  %v471_v2 = vmov 0.0   ;;  %vm472_vm3 = vmmov 0   ;;  %vm261_vm4 = vcmask 3072  }
  0x18   : > { %382 = vmatprep.subr.mxu0 %v471_v2  ;;  %384 = vmatprep.mubr.msk.f32.mxu0 %vm472_vm3, %v471_v2  ;;  %v257_v3 = vsel %vm256_vm2, %v184_v1, 0.0  ;;  %vm265_vm5 = vcmask 27648  }
  0x19   : > { %383 = vmatpush3.xpose.msra.mxu0 %v184_v1  ;;  %258 = vadd.xlane.f32.xlu0 %v257_v3 }
  0x1b   : > { %v255_v4 = vld [vmem:[%s171_s22] sm:$0xf] }
  0x1c   : > { %385 = vmatmul.mubr.f32.vlgmr.msra.gmra.mrb[0].mxu0 %v184_v1  ;;  %v263_v7 = vld [vmem:[%s175_s26] sm:$0xf] }
  0xa6   : > { %v259_v5 = vpop.xlane.xlu0 %258 }
  0xa7   : > { %v260_v6 = vadd.f32 %v259_v5, %v255_v4 }
  0xa9   : > { %262 = vst.msk [vmem:[%s171_s22] sm:$0xf] %vm261_vm4, %v260_v6 }
  0xef   : > { %v251_v8 = vpop.f32.mrb[0].mxu0 }
  0xf0   : > { %v264_v9 = vadd.f32 %v263_v7, %v251_v8  ;;  %v386_v10 = vpop.f32.mrb[1].mxu0 }
  0xf2   : > { %266 = vst.msk [vmem:[%s175_s26] sm:$0xf] %vm265_vm5, %v264_v9 }
  0xf3 PF: > { %s13_s13 = sadd.s32 1, %s468_s13   ;;  %s545_s9 = smov %s460_s11 }
  0xf4   : > { %p10_p8 = scmp.ge.s32.totalorder %s13_s13, 6   ;;  %s546_s10 = smov %s464_s12 }
  0xf5   : > { %s547_s11 = smov %s550_s14  ;;  %s548_s12 = smov %s554_s15 }
  0xf6   :  { %12 = sbr.rel (!%p10_p8) target bundleno = 3 (0x3), region = 70 }

// kernel: repconv_pallas.3
= control target key start
LH: loop header
LB: loop body
LE: loop exit
PB: predicated region body
PF: predicated region fallthrough
CT: control target
= control target key end

     0   :  { %s502_s12 = smov 0   ;;  %s504_s13 = smov 0   ;;  %s559_s0 = inlined_call_operand.vmem [shape: f32[2,4,256], index: 0, kind: input, shape index: {}]   ;;  %s560_s1 = inlined_call_operand.vmem [shape: f32[4,4], index: 1, kind: input, shape index: {}]   ;;  %s561_s2 = inlined_call_operand.vmem [shape: f32[4,1], index: 2, kind: input, shape index: {}]   ;;  %s562_s3 = inlined_call_operand.vmem [shape: f32[2,4,256], index: 3, kind: output, shape index: {}]  }
   0x1   :  { %s506_s14 = smov 0   ;;  %s508_s15 = smov 0  }
   0x2   :  { %s510_s16 = smov 0  }
   0x3 LB: > { %s22_s17 = sadd.s32 1, %s469_s14  ;;  %s25_s18 = sadd.s32 1, %s473_s15  ;;  %s477_s16 = sphi %s510_s16, %s13_s16   ;;  %s473_s15 = sphi %s508_s15, %s566_s15   ;;  %s469_s14 = sphi %s506_s14, %s565_s14   ;;  %s465_s13 = sphi %s504_s13, %s564_s13   ;;  %s461_s12 = sphi %s502_s12, %s563_s12  }
   0x4   : > { %p23_p0 = scmp.ge.s32.totalorder %s22_s17, 2  ;;  %p379_p1 = scmp.ge.s32.totalorder %s477_s16, 1 }
   0x5   : > { %p156_p2 = scmp.lt.s32.totalorder %s477_s16, 5 }
   0x6   : > { %s568_s17 = smov (%p23_p0, %s22_s17), 0  ;;  %s570_s18 = smov (!%p23_p0, %s25_s18), %s473_s15 }
   0x7   : > { %p157_p3 = pnand %p379_p1, %p156_p2  ;;  %p27_p4 = scmp.ge.s32.totalorder %s570_s18, 2 }
   0x8   : > { %p186_p5 = scmp.lt.s32.totalorder (!%p157_p3), %s465_s13, 1  ;;  %p188_p6 = scmp.lt.s32.totalorder (!%p157_p3), %s461_s12, 1  ;;  %v479_v0 = vmov (!%p157_p3), 0.0   ;;  %vm480_vm0 = vmmov (!%p157_p3), 0   ;;  %v204_v1 = vld [vmem:[%s561_s2] sm:$0xf] (!%p157_p3) }
   0x9   : > { %s572_s18 = smov (%p27_p4, %s570_s18), 0  ;;  %160 = sbr.rel (%p157_p3) target bundleno = 238 (0xee), region = 32 }
   0xa   : > { %390 = vmatprep.subr.mxu0 (!%p157_p3), %v479_v0  ;;  %392 = vmatprep.mubr.msk.f32.mxu0 (!%p157_p3), %vm480_vm0, %v479_v0  ;;  %v481_v2 = vmov (!%p157_p3), 0   ;;  %vm214_vm1 = vcmask (!%p157_p3), 1043456   ;;  %v202_v3 = vld [vmem:[%s560_s1] sm:$0xf] (!%p157_p3)  ;;  %vm210_vm2 = vcmask (!%p157_p3), 31744  }
   0xb   : > { %438 = vset.pattern.permute.xlu0 (!%p157_p3), %v481_v2 }
   0xc   : > { %207 = vperm.xlu0 (!%p157_p3), %438, %v204_v1  }
  0x10   : > { %s574_s13 = smov (!%p186_p5, %s465_s13), 1  ;;  %s576_s12 = smov (!%p188_p6, %s461_s12), 1 }
  0x11   : > { %s380_s21 = sshll.u32 %s574_s13, 1 }
  0x12   : > { %s191_s22 = sadd.s32 %s380_s21, %s576_s12 }
  0x13   : > { %s381_s23 = sshll.u32 %s191_s22, 2 }
  0x14   : > { %s193_s26 = scalar_lea.vmem %s559_s0, %s381_s23  ;;  %s201_s4 = scalar_lea.vmem %s562_s3, %s381_s23 }
  0x15   : > { %v203_v4 = vld [vmem:[%s193_s26] sm:$0xf] }
  0x16   : > { %391 = vmatpush3.msk.msra.mxu0 %vm214_vm1, %v203_v4 }
  0x17   : > { %393 = vmatmul.mubr.msk.f32.vlgmr.msra.gmra.mrb[0].mxu0 %vm210_vm2, %v202_v3 }
  0x8b   : > { %v208_v5 = vpop.permute.xlu0 %207 }
  0xea   : > { %v284_v6 = vpop.f32.mrb[0].mxu0 }
  0xeb   : > { %v285_v7 = vadd.f32 %v284_v6, %v208_v5  ;;  %v394_v8 = vpop.f32.mrb[1].mxu0 }
  0xed   : > { %288 = vst [vmem:[%s201_s4] sm:$0xf] %v285_v7 }
  0xee PF: > { %s13_s16 = sadd.s32 1, %s477_s16   ;;  %s563_s12 = smov %s469_s14 }
  0xef   : > { %p10_p7 = scmp.ge.s32.totalorder %s13_s16, 6   ;;  %s564_s13 = smov %s473_s15 }
  0xf0   : > { %s565_s14 = smov %s568_s17  ;;  %s566_s15 = smov %s572_s18 }
  0xf1   :  { %12 = sbr.rel (!%p10_p7) target bundleno = 3 (0x3), region = 62 }

</bundles_post_ra>
